<compile_context>
chip_gen: v5e
topology: v5e:2x2
jax: 0.10.0
libtpu: 0.0.40
codegen_flags: <defaults>
</compile_context>

<pallas_src>
import jax
import jax.numpy as jnp
from jax.experimental import pallas as pl
from jax.experimental.pallas import tpu as pltpu


def attention_pool_kernel(seq_ref, mask_ref, w_ref, b_ref, out_ref):
    # seq_ref:  (BT, S, H) VMEM, native dtype (no full-tile f32 cast)
    # mask_ref: (BT, S)    VMEM, native mask dtype
    # w_ref:    (1, H)     VMEM, shared nn.Linear weight
    # b_ref:    (1,)       SMEM, nn.Linear bias scalar
    # out_ref:  (BT, H)    VMEM
    seq = seq_ref[...]                                       # (BT, S, H) native dtype
    bt, _, h = seq.shape
    # f32 inputs: full-precision MXU passes so the kernel matches the f32 reference;
    # bf16 inputs: native single-pass MXU with f32 accumulation.
    prec = (jax.lax.Precision.HIGHEST if seq.dtype == jnp.float32
            else jax.lax.Precision.DEFAULT)

    # scores[b, s] = sum_h seq[b, s, h] * w[h] + bias  -- H-contraction on the MXU.
    w3 = jnp.broadcast_to(w_ref[...].astype(seq.dtype), (bt, 1, h))     # (BT, 1, H)
    scores = jnp.einsum("bqh,bsh->bqs", w3, seq,
                        preferred_element_type=jnp.float32,
                        precision=prec)[:, 0, :] + b_ref[0]             # (BT, S) f32

    # masked_fill(attention_mask == 0, -1e9)
    scores = jnp.where(mask_ref[...] == 0, jnp.float32(-1000000000.0), scores)

    # numerically stable softmax over the sequence axis (exact division for correctness)
    m = jnp.max(scores, axis=-1, keepdims=True)              # (BT, 1)
    e = jnp.exp(scores - m)                                   # (BT, S)  EUP exp
    denom = jnp.sum(e, axis=-1, keepdims=True)                # (BT, 1)
    probs = e / denom                                         # (BT, S) f32

    # pooled[b, h] = sum_s probs[b, s] * seq[b, s, h]  -- S-contraction on the MXU.
    pooled = jnp.einsum("bqs,bsh->bqh",
                        probs[:, None, :].astype(seq.dtype), seq,
                        preferred_element_type=jnp.float32,
                        precision=prec)[:, 0, :]              # (BT, H) f32
    out_ref[...] = pooled.astype(out_ref.dtype)


def _vmem_capacity_bytes():
    try:
        return int(pltpu.get_tpu_info().vmem_capacity_bytes)
    except Exception:
        return 64 * 1024 * 1024   # conservative: v7x per-TensorCore VMEM


def _choose_batch_block(B, S, H, itemsize, vmem_budget_bytes):
    """Pick BT so everything the kernel keeps resident per grid step fits the budget."""
    per_row = (2 * S * H * itemsize          # double-buffered seq tile (native dtype)
               + 2 * S * 4                   # double-buffered mask tile (<= 4 B/elem)
               + 2 * H * itemsize            # double-buffered out tile
               + 3 * S * 4                   # f32 scores / exp / probs temporaries
               + 2 * H * 4)                  # f32 pooled + broadcast weight row
    target = max(1, vmem_budget_bytes // per_row)
    if target >= B:
        # Whole batch fits in one grid step.  Give each v7x TensorCore its own step when the
        # halves still satisfy the (8, .) sublane rule on the (BT, S)/(BT, H) blocks.
        if B >= 16 and B % 16 == 0:
            return B // 2
        return B
    # BT < B: the (BT, S) mask / (BT, H) out blocks require BT % 8 == 0.  Prefer a BT that
    # divides B exactly so the wrapper never has to pad (an extra full HBM pass).
    bt = (target // 8) * 8
    while bt >= 8 and B % bt != 0:
        bt -= 8
    if bt >= 8:
        return bt
    return max(8, (target // 8) * 8)   # no divisor under the budget: caller pads the batch


def attention_pooling(sequence_output, attention_mask, weight, bias, *, block_b=None):
    """sequence_output: (B, S, H); attention_mask: (B, S); weight: (1, H); bias: (1,) -> (B, H)."""
    B, S, H = sequence_output.shape
    itemsize = jnp.dtype(sequence_output.dtype).itemsize

    vmem_cap = _vmem_capacity_bytes()
    vmem_limit = (3 * vmem_cap) // 4          # headroom for Mosaic internal scratch
    vmem_budget = vmem_cap // 2               # what the block-size heuristic may consume

    bt = block_b if block_b is not None else _choose_batch_block(B, S, H, itemsize, vmem_budget)
    bt = int(min(bt, B)) if bt else B

    Bp = B
    if B % bt != 0:
        # TODO(synk): replace this pad with in-kernel ragged-row masking (scalar-prefetched
        # true B); it only triggers when B has no multiple-of-8 divisor under the VMEM budget.
        Bp = ((B + bt - 1) // bt) * bt
        pad = Bp - B
        sequence_output = jnp.pad(sequence_output, ((0, pad), (0, 0), (0, 0)))
        attention_mask = jnp.pad(attention_mask, ((0, pad), (0, 0)))

    out = pl.pallas_call(
        attention_pool_kernel,
        out_shape=jax.ShapeDtypeStruct((Bp, H), sequence_output.dtype),
        grid=(Bp // bt,),
        in_specs=[
            pl.BlockSpec((bt, S, H), lambda b: (b, 0, 0)),       # batch block of sequences
            pl.BlockSpec((bt, S), lambda b: (b, 0)),             # matching mask rows (native dtype)
            pl.BlockSpec((1, H), lambda b: (0, 0)),              # shared linear weight
            pl.BlockSpec(memory_space=pltpu.MemorySpace.SMEM),   # bias scalar in SMEM
        ],
        out_specs=pl.BlockSpec((bt, H), lambda b: (b, 0)),       # (BT, H) output slab
        compiler_params=pltpu.CompilerParams(
            dimension_semantics=("parallel",),
            vmem_limit_bytes=int(vmem_limit),
        ),
    )(sequence_output, attention_mask, weight, bias)
    return out[:B] if Bp != B else out


def attention_pooling_ref(sequence_output, attention_mask, weight, bias):
    # Pure-JAX reference matching the PyTorch forward exactly.  HIGHEST precision so the
    # comparison is not polluted by TPU default bf16 matmul passes on f32 inputs.
    scores = jnp.einsum("bsh,oh->bso", sequence_output, weight,
                        precision=jax.lax.Precision.HIGHEST)[..., 0] + bias[0]   # (B, S)
    scores = jnp.where(attention_mask == 0, -1000000000.0, scores)
    probs = jax.nn.softmax(scores, axis=-1)                                      # (B, S)
    return jnp.einsum("bs,bsh->bh", probs, sequence_output,
                      precision=jax.lax.Precision.HIGHEST)                       # (B, H)


if __name__ == "__main__":
    B, S, H = 2, 8, 32
    key = jax.random.PRNGKey(0)
    k_seq, k_w, k_b = jax.random.split(key, 3)

    sequence_output = jax.random.normal(k_seq, (B, S, H), dtype=jnp.float32)
    # mask in its native narrow dtype (int32): batch 0 fully valid, batch 1 has 3 masked tail positions
    attention_mask = jnp.array(
        [[1, 1, 1, 1, 1, 1, 1, 1],
         [1, 1, 1, 1, 1, 0, 0, 0]], dtype=jnp.int32)

    # nn.Linear(hidden_size, 1): weight (1, H), bias (1,)
    weight = jax.random.normal(k_w, (1, H), dtype=jnp.float32) * 0.1
    bias = jax.random.normal(k_b, (1,), dtype=jnp.float32) * 0.1

    out = attention_pooling(sequence_output, attention_mask, weight, bias)
    jax.block_until_ready(out)

    ref = attention_pooling_ref(sequence_output, attention_mask, weight, bias)
    assert out.shape == (B, H)
    assert jnp.allclose(out, ref, atol=1e-3, rtol=1e-3), (out, ref)
    print("KERNEL_OK")
</pallas_src>

<mosaic_0001>
module attributes {stable_mosaic.version = 11 : i64} {
  func.func @attention_pool_kernel(%arg0: i32, %arg1: memref<2x8x32xf32, #tpu.memory_space<vmem>>, %arg2: memref<2x8xi32, #tpu.memory_space<vmem>>, %arg3: memref<1x32xf32, #tpu.memory_space<vmem>>, %arg4: memref<1xf32, #tpu.memory_space<smem>>, %arg5: memref<2x32xf32, #tpu.memory_space<vmem>>) attributes {dimension_semantics = [#tpu.dimension_semantics<parallel>], iteration_bounds = array<i64: 1>, scalar_prefetch = 0 : i64, scratch_operands = 0 : i64, tpu.core_type = #tpu.core_type<tc>, window_params = [{transform_indices = @transform_0, window_bounds = array<i64: 2, 8, 32>}, {transform_indices = @transform_1, window_bounds = array<i64: 2, 8>}, {pipeline_mode = #tpu.pipeline_mode<synchronous>, transform_indices = @transform_2, window_bounds = array<i64: 1, 32>}, {transform_indices = @transform_3, window_bounds = array<i64: 1>}, {transform_indices = @transform_4, window_bounds = array<i64: 2, 32>}]} {
    %c0 = arith.constant 0 : index
    %c0_0 = arith.constant 0 : index
    %c0_1 = arith.constant 0 : index
    %0 = vector.load %arg1[%c0, %c0_0, %c0_1] : memref<2x8x32xf32, #tpu.memory_space<vmem>>, vector<2x8x32xf32>
    %c0_2 = arith.constant 0 : index
    %c0_3 = arith.constant 0 : index
    %1 = vector.load %arg3[%c0_2, %c0_3] : memref<1x32xf32, #tpu.memory_space<vmem>>, vector<1x32xf32>
    %2 = vector.shape_cast %1 : vector<1x32xf32> to vector<1x1x32xf32>
    %3 = vector.broadcast %2 : vector<1x1x32xf32> to vector<2x1x32xf32>
    "tpu.trace_start"() <{level = 10 : i32, message = "bqh,bsh->bqs"}> : () -> ()
    %cst = arith.constant dense<0.000000e+00> : vector<2x1x8xf32>
    %4 = tpu.matmul %3, %0, %cst {dimension_numbers = #tpu.dot_dimension_numbers<[2], [2], [1], [1], [0, 0, 0, 1, 1, 1], [0], [0]>, precision = #tpu.contract_precision<fp32>} : vector<2x1x32xf32>, vector<2x8x32xf32>, vector<2x1x8xf32> -> vector<2x1x8xf32>
    "tpu.trace_stop"() : () -> ()
    %5 = vector.shape_cast %4 : vector<2x1x8xf32> to vector<2x8xf32>
    %c0_4 = arith.constant 0 : index
    %6 = memref.load %arg4[%c0_4] : memref<1xf32, #tpu.memory_space<smem>>
    %7 = vector.broadcast %6 : f32 to vector<2x8xf32>
    %8 = arith.addf %5, %7 : vector<2x8xf32>
    %c0_5 = arith.constant 0 : index
    %c0_6 = arith.constant 0 : index
    %9 = vector.load %arg2[%c0_5, %c0_6] : memref<2x8xi32, #tpu.memory_space<vmem>>, vector<2x8xi32>
    %c0_i32 = arith.constant 0 : i32
    %10 = vector.broadcast %c0_i32 : i32 to vector<2x8xi32>
    %11 = arith.cmpi eq, %9, %10 : vector<2x8xi32>
    %cst_7 = arith.constant -1.000000e+09 : f32
    %12 = vector.broadcast %cst_7 : f32 to vector<2x8xf32>
    %13 = arith.select %11, %12, %8 : vector<2x8xi1>, vector<2x8xf32>
    %cst_8 = arith.constant dense<0xFF800000> : vector<2xf32>
    %14 = vector.multi_reduction <maximumf>, %13, %cst_8 [1] : vector<2x8xf32> to vector<2xf32>
    %15 = vector.shape_cast %14 : vector<2xf32> to vector<2x1xf32>
    %16 = vector.broadcast %15 : vector<2x1xf32> to vector<2x8xf32>
    %17 = arith.subf %13, %16 : vector<2x8xf32>
    %18 = math.exp %17 : vector<2x8xf32>
    %cst_9 = arith.constant dense<0.000000e+00> : vector<2xf32>
    %19 = vector.multi_reduction <add>, %18, %cst_9 [1] : vector<2x8xf32> to vector<2xf32>
    %20 = vector.shape_cast %19 : vector<2xf32> to vector<2x1xf32>
    %21 = vector.broadcast %20 : vector<2x1xf32> to vector<2x8xf32>
    %22 = arith.divf %18, %21 : vector<2x8xf32>
    %23 = vector.shape_cast %22 : vector<2x8xf32> to vector<2x1x8xf32>
    "tpu.trace_start"() <{level = 10 : i32, message = "bqs,bsh->bqh"}> : () -> ()
    %cst_10 = arith.constant dense<0.000000e+00> : vector<2x1x32xf32>
    %24 = tpu.matmul %23, %0, %cst_10 {dimension_numbers = #tpu.dot_dimension_numbers<[2], [1], [1], [2], [0, 0, 0, 1, 1, 2], [0], [0]>, precision = #tpu.contract_precision<fp32>} : vector<2x1x8xf32>, vector<2x8x32xf32>, vector<2x1x32xf32> -> vector<2x1x32xf32>
    "tpu.trace_stop"() : () -> ()
    %25 = vector.shape_cast %24 : vector<2x1x32xf32> to vector<2x32xf32>
    %c0_11 = arith.constant 0 : index
    %c0_12 = arith.constant 0 : index
    %26 = vector.load %arg5[%c0_11, %c0_12] : memref<2x32xf32, #tpu.memory_space<vmem>>, vector<2x32xf32>
    tpu.vector_store %arg5[%c0_11, %c0_12], %25 {strides = array<i32>} : memref<2x32xf32, #tpu.memory_space<vmem>>, vector<2x32xf32>,
    return
  }
  func.func @transform_0(%arg0: i32) -> (i32, i32, i32) {
    %c0_i32 = arith.constant 0 : i32
    %c0_i32_0 = arith.constant 0 : i32
    %c0_i32_1 = arith.constant 0 : i32
    return %arg0, %c0_i32, %c0_i32_0 : i32, i32, i32
  }
  func.func @transform_1(%arg0: i32) -> (i32, i32) {
    %c0_i32 = arith.constant 0 : i32
    %c0_i32_0 = arith.constant 0 : i32
    return %arg0, %c0_i32 : i32, i32
  }
  func.func @transform_2(%arg0: i32) -> (i32, i32) {
    %c0_i32 = arith.constant 0 : i32
    %c0_i32_0 = arith.constant 0 : i32
    %c0_i32_1 = arith.constant 0 : i32
    return %c0_i32, %c0_i32_0 : i32, i32
  }
  func.func @transform_3(%arg0: i32) -> i32 {
    %c0_i32 = arith.constant 0 : i32
    %c0_i32_0 = arith.constant 0 : i32
    return %c0_i32 : i32
  }
  func.func @transform_4(%arg0: i32) -> (i32, i32) {
    %c0_i32 = arith.constant 0 : i32
    %c0_i32_0 = arith.constant 0 : i32
    return %arg0, %c0_i32 : i32, i32
  }
}

</mosaic_0001>

<bundles_post_ra>
// kernel: tpu_custom_call.1
= control target key start
LH: loop header
LB: loop body
LE: loop exit
PB: predicated region body
PF: predicated region fallthrough
CT: control target
= control target key end

     0   :  { %10 = vsyncpa [#allocation4], 0  ;;  %s817_s0 = inlined_call_operand.hbm [shape: f32[2,8,32], index: 0, kind: input, shape index: {}]   ;;  %s818_s1 = inlined_call_operand.vmem [shape: s32[2,8], index: 1, kind: input, shape index: {}]   ;;  %s819_s2 = inlined_call_operand.vmem [shape: f32[1,32], index: 2, kind: input, shape index: {}]   ;;  %s820_s3 = inlined_call_operand.<no memory space> [shape: f32[1], index: 3, kind: input, shape index: {}]   ;;  %s821_s4 = inlined_call_operand.hbm [shape: f32[2,32], index: 4, kind: output, shape index: {}]  }
   0x1   :  { %11 = vsyncpa [#allocation5], 0  ;;  %s16_s17 = sshll.u32 %s817_s0, 4  ;;  %s761_s18 = smov [#allocation3]   ;;  %s17_s17 = int_to_ptr.hbm [resolvable:$true] %s16_s17 }
   0x2   :  { %s18_s19 = sshll.u32 %s761_s18, 4  ;;  %s762_s20 = smov 128   ;;  %s19_s19 = int_to_ptr.vmem [resolvable:$true] %s18_s19 }
   0x3   :  { %s763_s21 = smov 8  }
   0x4   :  { %24 = dma.hbm_to_vmem [thread:$0]  %s17_s17, 256, %s19_s19, [#allocation4], %s762_s20, %s762_s20, %s763_s21  }
   0x5   :  { %757 = dma.done.wait [#allocation4], 256  }
   0x6   :  { %758 = vsyncadd [#allocation4], 4294967040  ;;  %vm38_vm0 = vcmask 261120   ;;  %v793_v0 = vld [vmem:[#allocation3] sm:$0xff]  ;;  %v798_v2 = vld [vmem:[#allocation3 + $0x8] sm:$0xff]  ;;  %v341_v44 = vstv %s820_s3  ;;  %vm349_vm1 = vcmask 1041409  }
   0x7   :  { %v37_v1 = vld [vmem:[%s819_s2] sm:$0x1]  ;;  %v43_v3 = vsel %vm38_vm0, %v793_v0, 0  ;;  %v192_v5 = vsel %vm38_vm0, %v798_v2, 0  ;;  %v398_v21 = vand.u32 4294901760, %v793_v0  ;;  %vm353_vm3 = vcmask 58368  }
   0x8   :  { %v40_v4 = vsel %vm38_vm0, %v37_v1, 0  ;;  %v60_v6 = vand.u32 4294901760, %v43_v3  ;;  %v209_v8 = vand.u32 4294901760, %v192_v5  ;;  %v344_v45 = vld [vmem:[%s818_s1] sm:$0x3]  ;;  %v546_v61 = vand.u32 4294901760, %v798_v2 }
   0x9   :  { %v62_v7 = vand.u32 4294901760, %v40_v4  ;;  %vm345_vm2 = vcmp.eq.s32.totalorder %v344_v45, 0  ;;  %v425_v57 = vsub.f32 %v793_v0, %v398_v21  ;;  %vm380_vm8 = vcmask 64512   ;;  %s764_s1 = smov [#allocation6]   ;;  %s691_s28 = sshll.u32 %s821_s4, 4  ;;  %s692_s28 = int_to_ptr.hbm [resolvable:$true] %s691_s28 }
   0xa   :  { %v87_v9 = vsub.f32 %v43_v3, %v60_v6  ;;  %137 = vmatpush.xpose.msra.mxu3 %v60_v6  ;;  %61 = vmatpush.xpose.msra.mxu0 %v60_v6  ;;  %v236_v11 = vsub.f32 %v192_v5, %v209_v8  ;;  %v573_v62 = vsub.f32 %v798_v2, %v546_v61  ;;  %s689_s3 = sshll.u32 %s764_s1, 4  ;;  %vm682_vm9 = vcmask 254976   ;;  %s690_s3 = int_to_ptr.vmem [resolvable:$true] %s689_s3 }
   0xb   :  { %v63_v10 = vsub.f32 %v40_v4, %v62_v7  ;;  %v426_v58 = vand.u32 4294901760, %v425_v57 }
   0xc   :  { %114 = vmatpush.xpose.msra.mxu2 %v87_v9  ;;  %v88_v13 = vand.u32 4294901760, %v87_v9  ;;  %v237_v14 = vand.u32 4294901760, %v236_v11  ;;  %v574_v63 = vand.u32 4294901760, %v573_v62 }
   0xd   :  { %v64_v12 = vand.u32 4294901760, %v63_v10  ;;  %v427_v59 = vsub.f32 %v425_v57, %v426_v58 }
   0xe   :  { %v89_v16 = vsub.f32 %v87_v9, %v88_v13  ;;  %163 = vmatpush.xpose.msrb.mxu0 %v88_v13  ;;  %v238_v17 = vsub.f32 %v236_v11, %v237_v14  ;;  %v575_v1 = vsub.f32 %v573_v62, %v574_v63 }
   0xf   :  { %141 = vmatmul.f32.vlgmr.msra.gmra.mxu3 %v64_v12  ;;  %v65_v15 = vsub.f32 %v63_v10, %v64_v12  ;;  %117 = vmatmul.f32.vlgmr.msra.gmra.mxu2 %v63_v10  ;;  %v428_v60 = vand.u32 4294901760, %v427_v59 }
  0x10   :  { %210 = vmatpush.xpose.msrb.mxu2 %v209_v8  ;;  %v90_v19 = vand.u32 4294901760, %v89_v16  ;;  %v239_v20 = vand.u32 4294901760, %v238_v17  ;;  %v576_v4 = vand.u32 4294901760, %v575_v1 }
  0x11   :  { %v66_v18 = vand.u32 4294901760, %v65_v15 }
  0x12   :  { %91 = vmatpush.xpose.msra.mxu1 %v90_v19  ;;  %240 = vmatpush.xpose.msrb.mxu3 %v239_v20 }
  0x13   :  { %67 = vmatmul.f32.vlgmr.msra.gmra.mxu0 %v66_v18 }
  0x14   :  { %312 = vmatpush.xpose.msra.mxu2 %v237_v14  ;;  %263 = vmatpush.xpose.msra.mxu0 %v236_v11 }
  0x15   :  { %93 = vmatmul.f32.vlgmr.msra.gmra.mxu1 %v62_v7 }
  0x16   :  { %185 = vmatpush.xpose.msrb.mxu1 %v60_v6  ;;  %334 = vmatpush.xpose.msra.mxu3 %v209_v8 }
  0x17   :  { %242 = vmatmul.f32.vlgmr.msrb.gmra.mxu3 %v62_v7  ;;  %216 = vmatmul.f32.vlgmr.msrb.gmra.mxu2 %v66_v18 }
  0x18   :  { %452 = vmatpush.msrb.mxu2 %v425_v57 }
  0x1a   :  { %286 = vmatpush.xpose.msra.mxu1 %v209_v8  ;;  %475 = vmatpush.msrb.mxu3 %v398_v21 }
  0x1b   :  { %165 = vmatmul.f32.vlgmr.msrb.gmra.mxu0 %v62_v7 }
  0x1c   :  { %399 = vmatpush.msrb.mxu0 %v398_v21 }
  0x1d   :  { %187 = vmatmul.f32.vlgmr.msrb.gmra.mxu1 %v62_v7 }
  0x1e   :  { %429 = vmatpush.msrb.mxu1 %v428_v60 }
  0x1f   :  { %336 = vmatmul.f32.vlgmr.msra.gmra.mxu3 %v62_v7  ;;  %314 = vmatmul.f32.vlgmr.msra.gmra.mxu2 %v62_v7 }
  0x20   :  { %547 = vmatpush.msra.mxu2 %v546_v61  ;;  %577 = vmatpush.msra.mxu3 %v576_v4 }
  0x23   :  { %266 = vmatmul.f32.vlgmr.msra.gmra.mxu0 %v63_v10 }
  0x24   :  { %501 = vmatpush.msra.mxu0 %v426_v58 }
  0x25   :  { %290 = vmatmul.f32.vlgmr.msra.gmra.mxu1 %v64_v12 }
  0x26   :  { %523 = vmatpush.msra.mxu1 %v398_v21 }
  0x90   :  { %v68_v22 = vpop.f32.mrf.mxu0 }
  0x92   :  { %v142_v23 = vpop.f32.mrf.mxu3  ;;  %v94_v24 = vpop.f32.mrf.mxu1 }
  0x93   :  { %v118_v25 = vpop.f32.mrf.mxu2  ;;  %v95_v26 = vadd.f32 %v94_v24, %v68_v22 }
  0x95   :  { %v119_v31 = vadd.f32 %v118_v25, %v95_v26 }
  0x97   :  { %v143_v33 = vadd.f32 %v142_v23, %v119_v31 }
  0x98   :  { %v166_v27 = vpop.f32.mrf.mxu0 }
  0x99   :  { %v167_v38 = vadd.f32 %v166_v27, %v143_v33 }
  0x9a   :  { %v243_v28 = vpop.f32.mrf.mxu3  ;;  %v188_v29 = vpop.f32.mrf.mxu1 }
  0x9b   :  { %v217_v30 = vpop.f32.mrf.mxu2  ;;  %v189_v42 = vadd.f32 %v188_v29, %v167_v38 }
  0x9c   :  { %v244_v32 = vadd.f32 %v243_v28, %v217_v30 }
  0x9d   :  { %v342_v47 = vadd.f32 %v341_v44, %v189_v42 }
  0xa0   :  { %v267_v34 = vpop.f32.mrf.mxu0 }
  0xa1   :  { %v268_v35 = vadd.f32 %v267_v34, %v244_v32 }
  0xa2   :  { %v291_v36 = vpop.f32.mrf.mxu1  ;;  %v337_v40 = vpop.f32.mrf.mxu3 }
  0xa3   :  { %v315_v37 = vpop.f32.mrf.mxu2  ;;  %v292_v39 = vadd.f32 %v291_v36, %v268_v35 }
  0xa5   :  { %v316_v41 = vadd.f32 %v315_v37, %v292_v39 }
  0xa7   :  { %v338_v43 = vadd.f32 %v337_v40, %v316_v41 }
  0xa9   :  { %v343_v46 = vadd.f32 %v341_v44, %v338_v43 }
  0xab   :  { %v348_v48 = vrot.slane %v343_v46, 7 }
  0xad   :  { %v350_v49 = vsel %vm349_vm1, %v348_v48, %v342_v47 }
  0xae   :  { %v352_v50 = vsel %vm345_vm2, -1e+09, %v350_v49 }
  0xaf   :  { %v354_v51 = vsel %vm353_vm3, %v352_v50, -inf }
  0xb0   :  { %355 = vmax.xlane.f32.xlu0 %v354_v51 }
 0x123   :  { %v356_v52 = vpop.xlane.xlu0 %355 }
 0x124   :  { %v357_v53 = vsub.f32 %v352_v50, %v356_v52 }
 0x126   :  { %v358_v54 = vmul.f32 1.442695, %v357_v53 }
 0x128   :  { %705 = vpow2.f32 %v358_v54 }
 0x12e   :  { %v706_v55 = vpop.eup %705 }
 0x12f   :  { %v360_v56 = vsel %vm353_vm3, %v706_v55, 0.0 }
 0x130   :  { %361 = vadd.xlane.f32.xlu0 %v360_v56 }
 0x1a3   :  { %v362_v3 = vpop.xlane.xlu0 %361 }
 0x1a4   :  { %707 = vrcp.f32 %v362_v3  ;;  %v374_v7 = vand.u32 2147483648, %v362_v3  ;;  %v372_v9 = vand.u32 2147483647, %v362_v3  ;;  %vm368_vm5 = vweird.f32 %v362_v3 }
 0x1a6   :  { %v375_v11 = vor.u32 1.1754944e-38, %v374_v7  ;;  %vm373_vm7 = vcmp.eq.f32.partialorder %v372_v9, 8.507059e+37 }
 0x1aa   :  { %v708_v5 = vpop.eup %707 }
 0x1ab   :  { %v364_v0 = vmul.f32 %v708_v5, %v362_v3  ;;  %vm369_vm4 = vweird.f32 %v708_v5 }
 0x1ac   :  { %vm370_vm6 = vmor %vm368_vm5, %vm369_vm4 }
 0x1ad   :  { %v365_v6 = vsub.f32 1.0, %v364_v0 }
 0x1af   :  { %v366_v8 = vmul.f32 %v708_v5, %v365_v6 }
 0x1b1   :  { %v367_v10 = vadd.f32 %v708_v5, %v366_v8 }
 0x1b3   :  { %v371_v12 = vsel %vm370_vm6, %v708_v5, %v367_v10 }
 0x1b4   :  { %v376_v2 = vsel %vm373_vm7, %v375_v11, %v371_v12 }
 0x1b5   :  { %v377_v13 = vmul.f32 %v706_v55, %v376_v2 }
 0x1b7   :  { %v379_v14 = vrot.slane %v377_v13, 1  ;;  %v381_v15 = vsel %vm380_vm8, %v377_v13, 0 }
 0x1b8   :  { %v400_v16 = vand.u32 4294901760, %v381_v15 }
 0x1b9   :  { %v529_v17 = vsel %vm380_vm8, %v379_v14, 0 }
 0x1ba   :  { %431 = vmatmul.f32.vlgmr.msrb.gmra.mxu1 %v400_v16  ;;  %v548_v18 = vand.u32 4294901760, %v529_v17  ;;  %v401_v19 = vsub.f32 %v381_v15, %v400_v16 }
 0x1bb   :  { %623 = vmatpush.msrb.mxu1 %v546_v61 }
 0x1bc   :  { %v549_v20 = vsub.f32 %v529_v17, %v548_v18  ;;  %455 = vmatmul.f32.vlgmr.msrb.gmra.mxu2 %v401_v19  ;;  %v402_v21 = vand.u32 4294901760, %v401_v19 }
 0x1bd   :  { %649 = vmatpush.msrb.mxu2 %v574_v63 }
 0x1be   :  { %479 = vmatmul.f32.vlgmr.msrb.gmra.mxu3 %v402_v21  ;;  %v403_v22 = vsub.f32 %v401_v19, %v402_v21  ;;  %v550_v23 = vand.u32 4294901760, %v549_v20 }
 0x1bf   :  { %671 = vmatpush.msrb.mxu3 %v546_v61 }
 0x1c0   :  { %v404_v24 = vand.u32 4294901760, %v403_v22  ;;  %v551_v25 = vsub.f32 %v549_v20, %v550_v23 }
 0x1c2   :  { %405 = vmatmul.f32.vlgmr.msrb.gmra.mxu0 %v404_v24  ;;  %525 = vmatmul.f32.vlgmr.msra.gmra.mxu1 %v400_v16  ;;  %v552_v26 = vand.u32 4294901760, %v551_v25 }
 0x1c3   :  { %600 = vmatpush.msrb.mxu0 %v573_v62 }
 0x1c4   :  { %553 = vmatmul.f32.vlgmr.msra.gmra.mxu2 %v552_v26 }
 0x1c6   :  { %579 = vmatmul.f32.vlgmr.msra.gmra.mxu3 %v548_v18 }
 0x1ca   :  { %503 = vmatmul.f32.vlgmr.msra.gmra.mxu0 %v400_v16  ;;  %627 = vmatmul.f32.vlgmr.msrb.gmra.mxu1 %v550_v23 }
 0x1cc   :  { %651 = vmatmul.f32.vlgmr.msrb.gmra.mxu2 %v548_v18 }
 0x1ce   :  { %673 = vmatmul.f32.vlgmr.msrb.gmra.mxu3 %v548_v18 }
 0x1d2   :  { %603 = vmatmul.f32.vlgmr.msrb.gmra.mxu0 %v549_v20 }
 0x237   :  { %v432_v27 = vpop.f32.mrf.mxu1 }
 0x23f   :  { %v406_v28 = vpop.f32.mrf.mxu0  ;;  %v456_v29 = vpop.f32.mrf.mxu2 }
 0x240   :  { %v526_v31 = vpop.f32.mrf.mxu1  ;;  %v433_v34 = vadd.f32 %v432_v27, %v406_v28 }
 0x241   :  { %v480_v30 = vpop.f32.mrf.mxu3 }
 0x242   :  { %v457_v36 = vadd.f32 %v456_v29, %v433_v34 }
 0x244   :  { %v481_v41 = vadd.f32 %v480_v30, %v457_v36 }
 0x247   :  { %v504_v32 = vpop.f32.mrf.mxu0  ;;  %v554_v33 = vpop.f32.mrf.mxu2 }
 0x248   :  { %v628_v40 = vpop.f32.mrf.mxu1  ;;  %v505_v44 = vadd.f32 %v504_v32, %v481_v41 }
 0x249   :  { %v580_v35 = vpop.f32.mrf.mxu3 }
 0x24a   :  { %v581_v37 = vadd.f32 %v580_v35, %v554_v33  ;;  %v527_v48 = vadd.f32 %v526_v31, %v505_v44 }
 0x24f   :  { %v604_v38 = vpop.f32.mrf.mxu0  ;;  %v652_v43 = vpop.f32.mrf.mxu2 }
 0x250   :  { %v605_v39 = vadd.f32 %v604_v38, %v581_v37 }
 0x251   :  { %v674_v46 = vpop.f32.mrf.mxu3 }
 0x252   :  { %v629_v42 = vadd.f32 %v628_v40, %v605_v39 }
 0x254   :  { %v653_v45 = vadd.f32 %v652_v43, %v629_v42 }
 0x256   :  { %v675_v47 = vadd.f32 %v674_v46, %v653_v45 }
 0x258   :  { %v679_v49 = vrot.slane %v675_v47, 7 }
 0x25a   :  { %v680_v50 = vsel %vm349_vm1, %v679_v49, %v527_v48 }
 0x25b   :  { %683 = vst.msk [vmem:[#allocation6] sm:$0x3] %vm682_vm9, %v680_v50 }
 0x25c   :  { %694 = dma.vmem_to_hbm [thread:$0]  %s690_s3, 32, %s692_s28, [#allocation5]  }
 0x25d   :  { %759 = dma.done.wait [#allocation5], 32  }
 0x25e   :  { %760 = vsyncadd [#allocation5], 4294967264 }
 0x25f   :  { %699 = vsyncpa [#allocation4], 1 }
 0x260   :  { %700 = vsyncpa [#allocation5], 1 }

</bundles_post_ra>
